<compile_context>
chip_gen: v6e
topology: v6e:2x2x1
jax: 0.10.0
libtpu: 0.0.40
codegen_flags: <defaults>
</compile_context>

<pallas_src>
import math
import functools

import jax
import jax.numpy as jnp
from jax.experimental import pallas as pl
from jax.experimental.pallas import tpu as pltpu

EPS = 1e-5
MASK_VALUE = -1e30                         # finite causal bias (no inf/NaN hazard)
DEFAULT_VMEM_LIMIT = 48 * 1024 * 1024      # fits v5e/v6e (128 MiB) and v7x (64 MiB)

_LAYER_PARAM_NAMES = ("ln1_w", "ln1_b", "w_qkv", "b_qkv", "w_ao", "b_ao",
                      "ln2_w", "ln2_b", "w_fc", "b_fc", "w_mo", "b_mo")


# ---------------------------------------------------------------------------
# in-kernel helpers (traced inside the Pallas kernels, all math in f32)
# ---------------------------------------------------------------------------
def _layernorm(x, w, b):
    mu = jnp.mean(x, axis=-1, keepdims=True)
    xc = x - mu
    var = jnp.mean(xc * xc, axis=-1, keepdims=True)
    return xc * jax.lax.rsqrt(var + EPS) * w + b


def _gelu_exact(x):
    # nn.GELU() default = exact erf formulation
    return 0.5 * x * (1.0 + jax.lax.erf(x * (1.0 / math.sqrt(2.0))))


# ---------------------------------------------------------------------------
# fused all-layers kernel: grid = (batch, layer)
# ---------------------------------------------------------------------------
def blocks_kernel(x_ref,
                  ln1_w_ref, ln1_b_ref,
                  w_qkv_ref, b_qkv_ref,      # (1, C, 3C), (1, 1, 3C); Q part pre-scaled
                  w_ao_ref, b_ao_ref,        # (1, C, C),  (1, 1, C)
                  ln2_w_ref, ln2_b_ref,
                  w_fc_ref, b_fc_ref,        # (1, C, 4C), (1, 1, 4C)
                  w_mo_ref, b_mo_ref,        # (1, 4C, C), (1, 1, C)
                  o_ref, *, n_head):
    layer = pl.program_id(1)

    # Layer 0: seed the resident residual stream.  o_ref keeps the same block
    # index across the layer axis, so it stays in VMEM until batch advances.
    @pl.when(layer == 0)
    def _():
        o_ref[...] = x_ref[...]

    x = o_ref[0].astype(jnp.float32)         # (T, C) residual stream, f32 math
    T, C = x.shape
    hd = C // n_head
    cdt = w_qkv_ref.dtype                    # MXU operand dtype (bf16)

    # finite additive causal bias, built once per grid step, shared by heads
    ti = jax.lax.broadcasted_iota(jnp.int32, (T, T), 0)   # query index
    si = jax.lax.broadcasted_iota(jnp.int32, (T, T), 1)   # key index
    causal_bias = jnp.where(si <= ti, 0.0, MASK_VALUE).astype(jnp.float32)

    # ---- causal multi-head self-attention ----
    h = _layernorm(x, ln1_w_ref[0, 0].astype(jnp.float32),
                   ln1_b_ref[0, 0].astype(jnp.float32))
    qkv = (jnp.dot(h.astype(cdt), w_qkv_ref[0],
                   preferred_element_type=jnp.float32)
           + b_qkv_ref[0, 0].astype(jnp.float32))          # (T, 3C)

    # TODO(synk): for long sequences (T >> 1K) this should become a
    # flash-style KV-tiled online-softmax loop to bound the (T,T) scores.
    w_ao = w_ao_ref[0]                                     # (C, C)
    att_out = jnp.broadcast_to(b_ao_ref[0, 0].astype(jnp.float32), (T, C))
    for hh in range(n_head):                 # static loop; no concatenate
        q_h = qkv[:, 0 * C + hh * hd: 0 * C + (hh + 1) * hd]  # pre-scaled by 1/sqrt(hd)
        k_h = qkv[:, 1 * C + hh * hd: 1 * C + (hh + 1) * hd]
        v_h = qkv[:, 2 * C + hh * hd: 2 * C + (hh + 1) * hd]
        # q @ k^T without an explicit transpose: contract the last dims
        s = jax.lax.dot_general(q_h.astype(cdt), k_h.astype(cdt),
                                (((1,), (1,)), ((), ())),
                                preferred_element_type=jnp.float32)    # (T, T)
        s = s + causal_bias
        s = s - jnp.max(s, axis=-1, keepdims=True)
        p = jnp.exp(s)
        p = p * pl.reciprocal(jnp.sum(p, axis=-1, keepdims=True), approx=True)
        y_h = jnp.dot(p.astype(cdt), v_h.astype(cdt),
                      preferred_element_type=jnp.float32)              # (T, hd)
        # fold this head straight into the output projection
        att_out = att_out + jnp.dot(y_h.astype(cdt),
                                    w_ao[hh * hd:(hh + 1) * hd, :],
                                    preferred_element_type=jnp.float32)
    x = x + att_out

    # ---- MLP ----
    h2 = _layernorm(x, ln2_w_ref[0, 0].astype(jnp.float32),
                    ln2_b_ref[0, 0].astype(jnp.float32))
    f = (jnp.dot(h2.astype(cdt), w_fc_ref[0],
                 preferred_element_type=jnp.float32)
         + b_fc_ref[0, 0].astype(jnp.float32))
    f = _gelu_exact(f)
    m = (jnp.dot(f.astype(cdt), w_mo_ref[0],
                 preferred_element_type=jnp.float32)
         + b_mo_ref[0, 0].astype(jnp.float32))

    o_ref[0] = (x + m).astype(o_ref.dtype)


def transformer_blocks(x, stacked, *, n_head, vmem_limit_bytes=DEFAULT_VMEM_LIMIT):
    B, T, C = x.shape
    weights = [stacked[name] for name in _LAYER_PARAM_NAMES]
    n_layer = weights[0].shape[0]
    # layer-indexed weight blocks -> double-buffered, i.e. layer l+1's weights
    # DMA from HBM while layer l computes.
    w_specs = [pl.BlockSpec((1,) + tuple(w.shape[1:]), lambda b, l: (l, 0, 0))
               for w in weights]
    return pl.pallas_call(
        functools.partial(blocks_kernel, n_head=n_head),
        out_shape=jax.ShapeDtypeStruct((B, T, C), x.dtype),
        grid=(B, n_layer),
        in_specs=[pl.BlockSpec((1, T, C), lambda b, l: (b, 0, 0))] + w_specs,
        out_specs=pl.BlockSpec((1, T, C), lambda b, l: (b, 0, 0)),
        compiler_params=pltpu.CompilerParams(
            dimension_semantics=("parallel", "arbitrary"),
            vmem_limit_bytes=vmem_limit_bytes),
    )(x, *weights)


# ---------------------------------------------------------------------------
# vocab-tiled final LayerNorm + weight-tied lm_head
# ---------------------------------------------------------------------------
def lm_head_kernel(x_ref, lnf_w_ref, lnf_b_ref, w_lm_ref, o_ref):
    x = x_ref[0].astype(jnp.float32)                      # (T, C)
    h = _layernorm(x, lnf_w_ref[0].astype(jnp.float32),
                   lnf_b_ref[0].astype(jnp.float32))
    o_ref[0] = jnp.dot(h.astype(w_lm_ref.dtype), w_lm_ref[...],
                       preferred_element_type=jnp.float32).astype(o_ref.dtype)


def lm_head_call(x, lnf_w, lnf_b, w_lm_T, *, vocab_tile=512,
                 vmem_limit_bytes=DEFAULT_VMEM_LIMIT):
    B, T, C = x.shape
    V = w_lm_T.shape[1]
    tv = min(vocab_tile, V)
    n_vt = pl.cdiv(V, tv)
    Vp = n_vt * tv
    if Vp != V:                      # pad vocab so tiles are lane-dense
        w_lm_T = jnp.pad(w_lm_T, ((0, 0), (0, Vp - V)))
    logits = pl.pallas_call(
        lm_head_kernel,
        out_shape=jax.ShapeDtypeStruct((B, T, Vp), jnp.float32),
        grid=(B, n_vt),
        in_specs=[pl.BlockSpec((1, T, C), lambda b, v: (b, 0, 0)),
                  pl.BlockSpec((1, C), lambda b, v: (0, 0)),
                  pl.BlockSpec((1, C), lambda b, v: (0, 0)),
                  pl.BlockSpec((C, tv), lambda b, v: (0, v))],
        out_specs=pl.BlockSpec((1, T, tv), lambda b, v: (b, 0, v)),
        compiler_params=pltpu.CompilerParams(
            dimension_semantics=("parallel", "parallel"),
            vmem_limit_bytes=vmem_limit_bytes),
    )(x, lnf_w, lnf_b, w_lm_T)
    return logits[..., :V] if Vp != V else logits


# ---------------------------------------------------------------------------
# deterministic parameter construction (mirrors module __init__ shapes)
# ---------------------------------------------------------------------------
def init_params(key, *, vocab_size, block_size, n_embd, n_head, n_layer,
                dtype=jnp.bfloat16):
    std = 0.02
    proj_std = 0.02 / math.sqrt(2 * n_layer)
    C = n_embd
    hd = C // n_head
    scale = 1.0 / math.sqrt(hd)

    keys = jax.random.split(key, 2 + 4 * n_layer)
    k_iter = iter(keys)

    wte = std * jax.random.normal(next(k_iter), (vocab_size, C), jnp.float32)
    wpe = std * jax.random.normal(next(k_iter), (block_size, C), jnp.float32)

    per_layer = {name: [] for name in _LAYER_PARAM_NAMES}
    for _ in range(n_layer):
        w_qkv = std * jax.random.normal(next(k_iter), (3 * C, C), jnp.float32)    # torch (out,in)
        w_ao = proj_std * jax.random.normal(next(k_iter), (C, C), jnp.float32)
        w_fc = std * jax.random.normal(next(k_iter), (4 * C, C), jnp.float32)
        w_mo = proj_std * jax.random.normal(next(k_iter), (C, 4 * C), jnp.float32)

        w_qkv_t = w_qkv.T                                  # (C, 3C): kernel does x @ W
        # fold the 1/sqrt(head_dim) attention scale into the Q projection
        w_qkv_t = w_qkv_t.at[:, :C].multiply(scale)
        b_qkv = jnp.zeros((1, 3 * C), jnp.float32)         # (Q-bias would be scaled too)

        per_layer["ln1_w"].append(jnp.ones((1, C), jnp.float32))
        per_layer["ln1_b"].append(jnp.zeros((1, C), jnp.float32))
        per_layer["w_qkv"].append(w_qkv_t)
        per_layer["b_qkv"].append(b_qkv)
        per_layer["w_ao"].append(w_ao.T)
        per_layer["b_ao"].append(jnp.zeros((1, C), jnp.float32))
        per_layer["ln2_w"].append(jnp.ones((1, C), jnp.float32))
        per_layer["ln2_b"].append(jnp.zeros((1, C), jnp.float32))
        per_layer["w_fc"].append(w_fc.T)
        per_layer["b_fc"].append(jnp.zeros((1, 4 * C), jnp.float32))
        per_layer["w_mo"].append(w_mo.T)
        per_layer["b_mo"].append(jnp.zeros((1, C), jnp.float32))

    layers = {name: jnp.stack(vals).astype(dtype) for name, vals in per_layer.items()}

    return dict(wte=wte.astype(dtype), wpe=wpe.astype(dtype), layers=layers,
                lnf_w=jnp.ones((1, C), dtype), lnf_b=jnp.zeros((1, C), dtype))


# ---------------------------------------------------------------------------
# full forward pass (embedding gather is glue; hot path is Pallas)
# ---------------------------------------------------------------------------
def forward(input_ids, params, *, n_head, vocab_tile=512,
            vmem_limit_bytes=DEFAULT_VMEM_LIMIT):
    B, T = input_ids.shape
    wte = params["wte"]
    tok_emb = jnp.take(wte, input_ids, axis=0)             # (B, T, C) gather (glue)
    pos_emb = params["wpe"][:T][None, :, :]                # (1, T, C)
    x = (tok_emb.astype(jnp.float32) + pos_emb.astype(jnp.float32)).astype(wte.dtype)
    x = transformer_blocks(x, params["layers"], n_head=n_head,
                           vmem_limit_bytes=vmem_limit_bytes)
    # lm_head weight is tied to wte: logits = ln_f(x) @ wte.T
    logits = lm_head_call(x, params["lnf_w"], params["lnf_b"], jnp.transpose(wte),
                          vocab_tile=vocab_tile, vmem_limit_bytes=vmem_limit_bytes)
    return logits                                          # (B, T, vocab_size) f32


if __name__ == "__main__":
    # small config consistent with the module's forward
    vocab_size = 64
    block_size = 8
    n_embd = 32
    n_head = 4
    n_layer = 2
    B, T = 2, 8

    key = jax.random.PRNGKey(0)
    k_param, k_ids = jax.random.split(key)
    params = init_params(k_param, vocab_size=vocab_size, block_size=block_size,
                         n_embd=n_embd, n_head=n_head, n_layer=n_layer)
    input_ids = jax.random.randint(k_ids, (B, T), 0, vocab_size, dtype=jnp.int32)

    logits = forward(input_ids, params, n_head=n_head)
    jax.block_until_ready(logits)
    assert logits.shape == (B, T, vocab_size), logits.shape
    assert bool(jnp.isfinite(logits).all())
    # TODO(synk): loss (CrossEntropyLoss) and autoregressive generate() are host-side
    # glue around the logits kernel and are not implemented here.
    print("KERNEL_OK")
</pallas_src>

<mosaic_0001>
module attributes {stable_mosaic.version = 11 : i64} {
  func.func @blocks_kernel(%arg0: i32, %arg1: i32, %arg2: memref<1x8x32xbf16, #tpu.memory_space<vmem>>, %arg3: memref<1x1x32xbf16, #tpu.memory_space<vmem>>, %arg4: memref<1x1x32xbf16, #tpu.memory_space<vmem>>, %arg5: memref<1x32x96xbf16, #tpu.memory_space<vmem>>, %arg6: memref<1x1x96xbf16, #tpu.memory_space<vmem>>, %arg7: memref<1x32x32xbf16, #tpu.memory_space<vmem>>, %arg8: memref<1x1x32xbf16, #tpu.memory_space<vmem>>, %arg9: memref<1x1x32xbf16, #tpu.memory_space<vmem>>, %arg10: memref<1x1x32xbf16, #tpu.memory_space<vmem>>, %arg11: memref<1x32x128xbf16, #tpu.memory_space<vmem>>, %arg12: memref<1x1x128xbf16, #tpu.memory_space<vmem>>, %arg13: memref<1x128x32xbf16, #tpu.memory_space<vmem>>, %arg14: memref<1x1x32xbf16, #tpu.memory_space<vmem>>, %arg15: memref<1x8x32xbf16, #tpu.memory_space<vmem>>) attributes {dimension_semantics = [#tpu.dimension_semantics<parallel>, #tpu.dimension_semantics<arbitrary>], iteration_bounds = array<i64: 2, 2>, scalar_prefetch = 0 : i64, scratch_operands = 0 : i64, tpu.core_type = #tpu.core_type<tc>, window_params = [{transform_indices = @transform_0, window_bounds = array<i64: 1, 8, 32>}, {transform_indices = @transform_1, window_bounds = array<i64: 1, 1, 32>}, {transform_indices = @transform_2, window_bounds = array<i64: 1, 1, 32>}, {transform_indices = @transform_3, window_bounds = array<i64: 1, 32, 96>}, {transform_indices = @transform_4, window_bounds = array<i64: 1, 1, 96>}, {transform_indices = @transform_5, window_bounds = array<i64: 1, 32, 32>}, {transform_indices = @transform_6, window_bounds = array<i64: 1, 1, 32>}, {transform_indices = @transform_7, window_bounds = array<i64: 1, 1, 32>}, {transform_indices = @transform_8, window_bounds = array<i64: 1, 1, 32>}, {transform_indices = @transform_9, window_bounds = array<i64: 1, 32, 128>}, {transform_indices = @transform_10, window_bounds = array<i64: 1, 1, 128>}, {transform_indices = @transform_11, window_bounds = array<i64: 1, 128, 32>}, {transform_indices = @transform_12, window_bounds = array<i64: 1, 1, 32>}, {transform_indices = @transform_13, window_bounds = array<i64: 1, 8, 32>}]} {
    %c0_i32 = arith.constant 0 : i32
    %0 = arith.cmpi eq, %arg1, %c0_i32 : i32
    %1 = arith.extui %0 : i1 to i32
    %c0_i32_0 = arith.constant 0 : i32
    %2 = arith.cmpi ne, %1, %c0_i32_0 : i32
    scf.if %2 {
      %c0_79 = arith.constant 0 : index
      %c0_80 = arith.constant 0 : index
      %c0_81 = arith.constant 0 : index
      %215 = vector.load %arg2[%c0_79, %c0_80, %c0_81] : memref<1x8x32xbf16, #tpu.memory_space<vmem>>, vector<1x8x32xbf16>
      %c0_82 = arith.constant 0 : index
      %c0_83 = arith.constant 0 : index
      %c0_84 = arith.constant 0 : index
      %216 = vector.load %arg15[%c0_82, %c0_83, %c0_84] : memref<1x8x32xbf16, #tpu.memory_space<vmem>>, vector<1x8x32xbf16>
      tpu.vector_store %arg15[%c0_82, %c0_83, %c0_84], %215 {strides = array<i32>} : memref<1x8x32xbf16, #tpu.memory_space<vmem>>, vector<1x8x32xbf16>,
    } else {
    }
    %c0 = arith.constant 0 : index
    %c0_1 = arith.constant 0 : index
    %c0_2 = arith.constant 0 : index
    %3 = vector.load %arg15[%c0, %c0_1, %c0_2] : memref<1x8x32xbf16, #tpu.memory_space<vmem>>, vector<1x8x32xbf16>
    %4 = vector.shape_cast %3 : vector<1x8x32xbf16> to vector<8x32xbf16>
    %5 = arith.extf %4 : vector<8x32xbf16> to vector<8x32xf32>
    %6 = tpu.iota {dimensions = array<i32: 0>} : vector<8x8xi32>
    %7 = tpu.iota {dimensions = array<i32: 1>} : vector<8x8xi32>
    %8 = arith.cmpi sle, %7, %6 : vector<8x8xi32>
    %cst = arith.constant 0.000000e+00 : f32
    %cst_3 = arith.constant -1.000000e+30 : f32
    %9 = vector.broadcast %cst : f32 to vector<8x8xf32>
    %10 = vector.broadcast %cst_3 : f32 to vector<8x8xf32>
    %11 = arith.select %8, %9, %10 : vector<8x8xi1>, vector<8x8xf32>
    %c0_4 = arith.constant 0 : index
    %c0_5 = arith.constant 0 : index
    %c0_6 = arith.constant 0 : index
    %12 = vector.load %arg3[%c0_4, %c0_5, %c0_6] : memref<1x1x32xbf16, #tpu.memory_space<vmem>>, vector<1x1x32xbf16>
    %13 = vector.shape_cast %12 : vector<1x1x32xbf16> to vector<32xbf16>
    %14 = arith.extf %13 : vector<32xbf16> to vector<32xf32>
    %c0_7 = arith.constant 0 : index
    %c0_8 = arith.constant 0 : index
    %c0_9 = arith.constant 0 : index
    %15 = vector.load %arg4[%c0_7, %c0_8, %c0_9] : memref<1x1x32xbf16, #tpu.memory_space<vmem>>, vector<1x1x32xbf16>
    %16 = vector.shape_cast %15 : vector<1x1x32xbf16> to vector<32xbf16>
    %17 = arith.extf %16 : vector<32xbf16> to vector<32xf32>
    %cst_10 = arith.constant dense<0.000000e+00> : vector<8xf32>
    %18 = vector.multi_reduction <add>, %5, %cst_10 [1] : vector<8x32xf32> to vector<8xf32>
    %19 = vector.shape_cast %18 : vector<8xf32> to vector<8x1xf32>
    %cst_11 = arith.constant 3.200000e+01 : f32
    %20 = vector.broadcast %cst_11 : f32 to vector<8x1xf32>
    %21 = arith.divf %19, %20 : vector<8x1xf32>
    %22 = vector.broadcast %21 : vector<8x1xf32> to vector<8x32xf32>
    %23 = arith.subf %5, %22 : vector<8x32xf32>
    %24 = arith.mulf %23, %23 : vector<8x32xf32>
    %cst_12 = arith.constant dense<0.000000e+00> : vector<8xf32>
    %25 = vector.multi_reduction <add>, %24, %cst_12 [1] : vector<8x32xf32> to vector<8xf32>
    %26 = vector.shape_cast %25 : vector<8xf32> to vector<8x1xf32>
    %cst_13 = arith.constant 3.200000e+01 : f32
    %27 = vector.broadcast %cst_13 : f32 to vector<8x1xf32>
    %28 = arith.divf %26, %27 : vector<8x1xf32>
    %cst_14 = arith.constant 9.99999974E-6 : f32
    %29 = vector.broadcast %cst_14 : f32 to vector<8x1xf32>
    %30 = arith.addf %28, %29 : vector<8x1xf32>
    %31 = math.rsqrt %30 : vector<8x1xf32>
    %32 = vector.broadcast %31 : vector<8x1xf32> to vector<8x32xf32>
    %33 = arith.mulf %23, %32 : vector<8x32xf32>
    %34 = vector.shape_cast %14 : vector<32xf32> to vector<1x32xf32>
    %35 = vector.broadcast %34 : vector<1x32xf32> to vector<8x32xf32>
    %36 = arith.mulf %33, %35 : vector<8x32xf32>
    %37 = vector.shape_cast %17 : vector<32xf32> to vector<1x32xf32>
    %38 = vector.broadcast %37 : vector<1x32xf32> to vector<8x32xf32>
    %39 = arith.addf %36, %38 : vector<8x32xf32>
    %40 = arith.truncf %39 : vector<8x32xf32> to vector<8x32xbf16>
    %c0_15 = arith.constant 0 : index
    %c0_16 = arith.constant 0 : index
    %c0_17 = arith.constant 0 : index
    %41 = vector.load %arg5[%c0_15, %c0_16, %c0_17] : memref<1x32x96xbf16, #tpu.memory_space<vmem>>, vector<1x32x96xbf16>
    %42 = vector.shape_cast %41 : vector<1x32x96xbf16> to vector<32x96xbf16>
    %cst_18 = arith.constant dense<0.000000e+00> : vector<8x96xf32>
    %43 = tpu.matmul %40, %42, %cst_18 {dimension_numbers = #tpu.dot_dimension_numbers<[1], [0], [0], [1], [0, 0, 1, 1], [], []>} : vector<8x32xbf16>, vector<32x96xbf16>, vector<8x96xf32> -> vector<8x96xf32>
    %c0_19 = arith.constant 0 : index
    %c0_20 = arith.constant 0 : index
    %c0_21 = arith.constant 0 : index
    %44 = vector.load %arg6[%c0_19, %c0_20, %c0_21] : memref<1x1x96xbf16, #tpu.memory_space<vmem>>, vector<1x1x96xbf16>
    %45 = vector.shape_cast %44 : vector<1x1x96xbf16> to vector<96xbf16>
    %46 = arith.extf %45 : vector<96xbf16> to vector<96xf32>
    %47 = vector.shape_cast %46 : vector<96xf32> to vector<1x96xf32>
    %48 = vector.broadcast %47 : vector<1x96xf32> to vector<8x96xf32>
    %49 = arith.addf %43, %48 : vector<8x96xf32>
    %c0_22 = arith.constant 0 : index
    %c0_23 = arith.constant 0 : index
    %c0_24 = arith.constant 0 : index
    %50 = vector.load %arg7[%c0_22, %c0_23, %c0_24] : memref<1x32x32xbf16, #tpu.memory_space<vmem>>, vector<1x32x32xbf16>
    %51 = vector.shape_cast %50 : vector<1x32x32xbf16> to vector<32x32xbf16>
    %c0_25 = arith.constant 0 : index
    %c0_26 = arith.constant 0 : index
    %c0_27 = arith.constant 0 : index
    %52 = vector.load %arg8[%c0_25, %c0_26, %c0_27] : memref<1x1x32xbf16, #tpu.memory_space<vmem>>, vector<1x1x32xbf16>
    %53 = vector.shape_cast %52 : vector<1x1x32xbf16> to vector<32xbf16>
    %54 = arith.extf %53 : vector<32xbf16> to vector<32xf32>
    %55 = vector.shape_cast %54 : vector<32xf32> to vector<1x32xf32>
    %56 = vector.broadcast %55 : vector<1x32xf32> to vector<8x32xf32>
    %57 = vector.extract_strided_slice %49 {offsets = [0, 0], sizes = [8, 8], strides = [1, 1]} : vector<8x96xf32> to vector<8x8xf32>
    %58 = vector.extract_strided_slice %49 {offsets = [0, 32], sizes = [8, 8], strides = [1, 1]} : vector<8x96xf32> to vector<8x8xf32>
    %59 = vector.extract_strided_slice %49 {offsets = [0, 64], sizes = [8, 8], strides = [1, 1]} : vector<8x96xf32> to vector<8x8xf32>
    %60 = arith.truncf %57 : vector<8x8xf32> to vector<8x8xbf16>
    %61 = arith.truncf %58 : vector<8x8xf32> to vector<8x8xbf16>
    %cst_28 = arith.constant dense<0.000000e+00> : vector<8x8xf32>
    %62 = tpu.matmul %60, %61, %cst_28 {dimension_numbers = #tpu.dot_dimension_numbers<[1], [1], [0], [0], [0, 0, 1, 0], [], []>} : vector<8x8xbf16>, vector<8x8xbf16>, vector<8x8xf32> -> vector<8x8xf32>
    %63 = arith.addf %62, %11 : vector<8x8xf32>
    %cst_29 = arith.constant dense<0xFF800000> : vector<8xf32>
    %64 = vector.multi_reduction <maximumf>, %63, %cst_29 [1] : vector<8x8xf32> to vector<8xf32>
    %65 = vector.shape_cast %64 : vector<8xf32> to vector<8x1xf32>
    %66 = vector.broadcast %65 : vector<8x1xf32> to vector<8x8xf32>
    %67 = arith.subf %63, %66 : vector<8x8xf32>
    %68 = math.exp %67 : vector<8x8xf32>
    %cst_30 = arith.constant dense<0.000000e+00> : vector<8xf32>
    %69 = vector.multi_reduction <add>, %68, %cst_30 [1] : vector<8x8xf32> to vector<8xf32>
    %70 = vector.shape_cast %69 : vector<8xf32> to vector<8x1xf32>
    %71 = tpu.reciprocal %70 {approx = true} : vector<8x1xf32> -> vector<8x1xf32>
    %72 = vector.broadcast %71 : vector<8x1xf32> to vector<8x8xf32>
    %73 = arith.mulf %68, %72 : vector<8x8xf32>
    %74 = arith.truncf %73 : vector<8x8xf32> to vector<8x8xbf16>
    %75 = arith.truncf %59 : vector<8x8xf32> to vector<8x8xbf16>
    %cst_31 = arith.constant dense<0.000000e+00> : vector<8x8xf32>
    %76 = tpu.matmul %74, %75, %cst_31 {dimension_numbers = #tpu.dot_dimension_numbers<[1], [0], [0], [1], [0, 0, 1, 1], [], []>} : vector<8x8xbf16>, vector<8x8xbf16>, vector<8x8xf32> -> vector<8x8xf32>
    %77 = arith.truncf %76 : vector<8x8xf32> to vector<8x8xbf16>
    %78 = vector.extract_strided_slice %51 {offsets = [0, 0], sizes = [8, 32], strides = [1, 1]} : vector<32x32xbf16> to vector<8x32xbf16>
    %cst_32 = arith.constant dense<0.000000e+00> : vector<8x32xf32>
    %79 = tpu.matmul %77, %78, %cst_32 {dimension_numbers = #tpu.dot_dimension_numbers<[1], [0], [0], [1], [0, 0, 1, 1], [], []>} : vector<8x8xbf16>, vector<8x32xbf16>, vector<8x32xf32> -> vector<8x32xf32>
    %80 = arith.addf %56, %79 : vector<8x32xf32>
    %81 = vector.extract_strided_slice %49 {offsets = [0, 8], sizes = [8, 8], strides = [1, 1]} : vector<8x96xf32> to vector<8x8xf32>
    %82 = vector.extract_strided_slice %49 {offsets = [0, 40], sizes = [8, 8], strides = [1, 1]} : vector<8x96xf32> to vector<8x8xf32>
    %83 = vector.extract_strided_slice %49 {offsets = [0, 72], sizes = [8, 8], strides = [1, 1]} : vector<8x96xf32> to vector<8x8xf32>
    %84 = arith.truncf %81 : vector<8x8xf32> to vector<8x8xbf16>
    %85 = arith.truncf %82 : vector<8x8xf32> to vector<8x8xbf16>
    %cst_33 = arith.constant dense<0.000000e+00> : vector<8x8xf32>
    %86 = tpu.matmul %84, %85, %cst_33 {dimension_numbers = #tpu.dot_dimension_numbers<[1], [1], [0], [0], [0, 0, 1, 0], [], []>} : vector<8x8xbf16>, vector<8x8xbf16>, vector<8x8xf32> -> vector<8x8xf32>
    %87 = arith.addf %86, %11 : vector<8x8xf32>
    %cst_34 = arith.constant dense<0xFF800000> : vector<8xf32>
    %88 = vector.multi_reduction <maximumf>, %87, %cst_34 [1] : vector<8x8xf32> to vector<8xf32>
    %89 = vector.shape_cast %88 : vector<8xf32> to vector<8x1xf32>
    %90 = vector.broadcast %89 : vector<8x1xf32> to vector<8x8xf32>
    %91 = arith.subf %87, %90 : vector<8x8xf32>
    %92 = math.exp %91 : vector<8x8xf32>
    %cst_35 = arith.constant dense<0.000000e+00> : vector<8xf32>
    %93 = vector.multi_reduction <add>, %92, %cst_35 [1] : vector<8x8xf32> to vector<8xf32>
    %94 = vector.shape_cast %93 : vector<8xf32> to vector<8x1xf32>
    %95 = tpu.reciprocal %94 {approx = true} : vector<8x1xf32> -> vector<8x1xf32>
    %96 = vector.broadcast %95 : vector<8x1xf32> to vector<8x8xf32>
    %97 = arith.mulf %92, %96 : vector<8x8xf32>
    %98 = arith.truncf %97 : vector<8x8xf32> to vector<8x8xbf16>
    %99 = arith.truncf %83 : vector<8x8xf32> to vector<8x8xbf16>
    %cst_36 = arith.constant dense<0.000000e+00> : vector<8x8xf32>
    %100 = tpu.matmul %98, %99, %cst_36 {dimension_numbers = #tpu.dot_dimension_numbers<[1], [0], [0], [1], [0, 0, 1, 1], [], []>} : vector<8x8xbf16>, vector<8x8xbf16>, vector<8x8xf32> -> vector<8x8xf32>
    %101 = arith.truncf %100 : vector<8x8xf32> to vector<8x8xbf16>
    %102 = vector.extract_strided_slice %51 {offsets = [8, 0], sizes = [8, 32], strides = [1, 1]} : vector<32x32xbf16> to vector<8x32xbf16>
    %cst_37 = arith.constant dense<0.000000e+00> : vector<8x32xf32>
    %103 = tpu.matmul %101, %102, %cst_37 {dimension_numbers = #tpu.dot_dimension_numbers<[1], [0], [0], [1], [0, 0, 1, 1], [], []>} : vector<8x8xbf16>, vector<8x32xbf16>, vector<8x32xf32> -> vector<8x32xf32>
    %104 = arith.addf %80, %103 : vector<8x32xf32>
    %105 = vector.extract_strided_slice %49 {offsets = [0, 16], sizes = [8, 8], strides = [1, 1]} : vector<8x96xf32> to vector<8x8xf32>
    %106 = vector.extract_strided_slice %49 {offsets = [0, 48], sizes = [8, 8], strides = [1, 1]} : vector<8x96xf32> to vector<8x8xf32>
    %107 = vector.extract_strided_slice %49 {offsets = [0, 80], sizes = [8, 8], strides = [1, 1]} : vector<8x96xf32> to vector<8x8xf32>
    %108 = arith.truncf %105 : vector<8x8xf32> to vector<8x8xbf16>
    %109 = arith.truncf %106 : vector<8x8xf32> to vector<8x8xbf16>
    %cst_38 = arith.constant dense<0.000000e+00> : vector<8x8xf32>
    %110 = tpu.matmul %108, %109, %cst_38 {dimension_numbers = #tpu.dot_dimension_numbers<[1], [1], [0], [0], [0, 0, 1, 0], [], []>} : vector<8x8xbf16>, vector<8x8xbf16>, vector<8x8xf32> -> vector<8x8xf32>
    %111 = arith.addf %110, %11 : vector<8x8xf32>
    %cst_39 = arith.constant dense<0xFF800000> : vector<8xf32>
    %112 = vector.multi_reduction <maximumf>, %111, %cst_39 [1] : vector<8x8xf32> to vector<8xf32>
    %113 = vector.shape_cast %112 : vector<8xf32> to vector<8x1xf32>
    %114 = vector.broadcast %113 : vector<8x1xf32> to vector<8x8xf32>
    %115 = arith.subf %111, %114 : vector<8x8xf32>
    %116 = math.exp %115 : vector<8x8xf32>
    %cst_40 = arith.constant dense<0.000000e+00> : vector<8xf32>
    %117 = vector.multi_reduction <add>, %116, %cst_40 [1] : vector<8x8xf32> to vector<8xf32>
    %118 = vector.shape_cast %117 : vector<8xf32> to vector<8x1xf32>
    %119 = tpu.reciprocal %118 {approx = true} : vector<8x1xf32> -> vector<8x1xf32>
    %120 = vector.broadcast %119 : vector<8x1xf32> to vector<8x8xf32>
    %121 = arith.mulf %116, %120 : vector<8x8xf32>
    %122 = arith.truncf %121 : vector<8x8xf32> to vector<8x8xbf16>
    %123 = arith.truncf %107 : vector<8x8xf32> to vector<8x8xbf16>
    %cst_41 = arith.constant dense<0.000000e+00> : vector<8x8xf32>
    %124 = tpu.matmul %122, %123, %cst_41 {dimension_numbers = #tpu.dot_dimension_numbers<[1], [0], [0], [1], [0, 0, 1, 1], [], []>} : vector<8x8xbf16>, vector<8x8xbf16>, vector<8x8xf32> -> vector<8x8xf32>
    %125 = arith.truncf %124 : vector<8x8xf32> to vector<8x8xbf16>
    %126 = vector.extract_strided_slice %51 {offsets = [16, 0], sizes = [8, 32], strides = [1, 1]} : vector<32x32xbf16> to vector<8x32xbf16>
    %cst_42 = arith.constant dense<0.000000e+00> : vector<8x32xf32>
    %127 = tpu.matmul %125, %126, %cst_42 {dimension_numbers = #tpu.dot_dimension_numbers<[1], [0], [0], [1], [0, 0, 1, 1], [], []>} : vector<8x8xbf16>, vector<8x32xbf16>, vector<8x32xf32> -> vector<8x32xf32>
    %128 = arith.addf %104, %127 : vector<8x32xf32>
    %129 = vector.extract_strided_slice %49 {offsets = [0, 24], sizes = [8, 8], strides = [1, 1]} : vector<8x96xf32> to vector<8x8xf32>
    %130 = vector.extract_strided_slice %49 {offsets = [0, 56], sizes = [8, 8], strides = [1, 1]} : vector<8x96xf32> to vector<8x8xf32>
    %131 = vector.extract_strided_slice %49 {offsets = [0, 88], sizes = [8, 8], strides = [1, 1]} : vector<8x96xf32> to vector<8x8xf32>
    %132 = arith.truncf %129 : vector<8x8xf32> to vector<8x8xbf16>
    %133 = arith.truncf %130 : vector<8x8xf32> to vector<8x8xbf16>
    %cst_43 = arith.constant dense<0.000000e+00> : vector<8x8xf32>
    %134 = tpu.matmul %132, %133, %cst_43 {dimension_numbers = #tpu.dot_dimension_numbers<[1], [1], [0], [0], [0, 0, 1, 0], [], []>} : vector<8x8xbf16>, vector<8x8xbf16>, vector<8x8xf32> -> vector<8x8xf32>
    %135 = arith.addf %134, %11 : vector<8x8xf32>
    %cst_44 = arith.constant dense<0xFF800000> : vector<8xf32>
    %136 = vector.multi_reduction <maximumf>, %135, %cst_44 [1] : vector<8x8xf32> to vector<8xf32>
    %137 = vector.shape_cast %136 : vector<8xf32> to vector<8x1xf32>
    %138 = vector.broadcast %137 : vector<8x1xf32> to vector<8x8xf32>
    %139 = arith.subf %135, %138 : vector<8x8xf32>
    %140 = math.exp %139 : vector<8x8xf32>
    %cst_45 = arith.constant dense<0.000000e+00> : vector<8xf32>
    %141 = vector.multi_reduction <add>, %140, %cst_45 [1] : vector<8x8xf32> to vector<8xf32>
    %142 = vector.shape_cast %141 : vector<8xf32> to vector<8x1xf32>
    %143 = tpu.reciprocal %142 {approx = true} : vector<8x1xf32> -> vector<8x1xf32>
    %144 = vector.broadcast %143 : vector<8x1xf32> to vector<8x8xf32>
    %145 = arith.mulf %140, %144 : vector<8x8xf32>
    %146 = arith.truncf %145 : vector<8x8xf32> to vector<8x8xbf16>
    %147 = arith.truncf %131 : vector<8x8xf32> to vector<8x8xbf16>
    %cst_46 = arith.constant dense<0.000000e+00> : vector<8x8xf32>
    %148 = tpu.matmul %146, %147, %cst_46 {dimension_numbers = #tpu.dot_dimension_numbers<[1], [0], [0], [1], [0, 0, 1, 1], [], []>} : vector<8x8xbf16>, vector<8x8xbf16>, vector<8x8xf32> -> vector<8x8xf32>
    %149 = arith.truncf %148 : vector<8x8xf32> to vector<8x8xbf16>
    %150 = vector.extract_strided_slice %51 {offsets = [24, 0], sizes = [8, 32], strides = [1, 1]} : vector<32x32xbf16> to vector<8x32xbf16>
    %cst_47 = arith.constant dense<0.000000e+00> : vector<8x32xf32>
    %151 = tpu.matmul %149, %150, %cst_47 {dimension_numbers = #tpu.dot_dimension_numbers<[1], [0], [0], [1], [0, 0, 1, 1], [], []>} : vector<8x8xbf16>, vector<8x32xbf16>, vector<8x32xf32> -> vector<8x32xf32>
    %152 = arith.addf %128, %151 : vector<8x32xf32>
    %153 = arith.addf %5, %152 : vector<8x32xf32>
    %c0_48 = arith.constant 0 : index
    %c0_49 = arith.constant 0 : index
    %c0_50 = arith.constant 0 : index
    %154 = vector.load %arg9[%c0_48, %c0_49, %c0_50] : memref<1x1x32xbf16, #tpu.memory_space<vmem>>, vector<1x1x32xbf16>
    %155 = vector.shape_cast %154 : vector<1x1x32xbf16> to vector<32xbf16>
    %156 = arith.extf %155 : vector<32xbf16> to vector<32xf32>
    %c0_51 = arith.constant 0 : index
    %c0_52 = arith.constant 0 : index
    %c0_53 = arith.constant 0 : index
    %157 = vector.load %arg10[%c0_51, %c0_52, %c0_53] : memref<1x1x32xbf16, #tpu.memory_space<vmem>>, vector<1x1x32xbf16>
    %158 = vector.shape_cast %157 : vector<1x1x32xbf16> to vector<32xbf16>
    %159 = arith.extf %158 : vector<32xbf16> to vector<32xf32>
    %cst_54 = arith.constant dense<0.000000e+00> : vector<8xf32>
    %160 = vector.multi_reduction <add>, %153, %cst_54 [1] : vector<8x32xf32> to vector<8xf32>
    %161 = vector.shape_cast %160 : vector<8xf32> to vector<8x1xf32>
    %cst_55 = arith.constant 3.200000e+01 : f32
    %162 = vector.broadcast %cst_55 : f32 to vector<8x1xf32>
    %163 = arith.divf %161, %162 : vector<8x1xf32>
    %164 = vector.broadcast %163 : vector<8x1xf32> to vector<8x32xf32>
    %165 = arith.subf %153, %164 : vector<8x32xf32>
    %166 = arith.mulf %165, %165 : vector<8x32xf32>
    %cst_56 = arith.constant dense<0.000000e+00> : vector<8xf32>
    %167 = vector.multi_reduction <add>, %166, %cst_56 [1] : vector<8x32xf32> to vector<8xf32>
    %168 = vector.shape_cast %167 : vector<8xf32> to vector<8x1xf32>
    %cst_57 = arith.constant 3.200000e+01 : f32
    %169 = vector.broadcast %cst_57 : f32 to vector<8x1xf32>
    %170 = arith.divf %168, %169 : vector<8x1xf32>
    %cst_58 = arith.constant 9.99999974E-6 : f32
    %171 = vector.broadcast %cst_58 : f32 to vector<8x1xf32>
    %172 = arith.addf %170, %171 : vector<8x1xf32>
    %173 = math.rsqrt %172 : vector<8x1xf32>
    %174 = vector.broadcast %173 : vector<8x1xf32> to vector<8x32xf32>
    %175 = arith.mulf %165, %174 : vector<8x32xf32>
    %176 = vector.shape_cast %156 : vector<32xf32> to vector<1x32xf32>
    %177 = vector.broadcast %176 : vector<1x32xf32> to vector<8x32xf32>
    %178 = arith.mulf %175, %177 : vector<8x32xf32>
    %179 = vector.shape_cast %159 : vector<32xf32> to vector<1x32xf32>
    %180 = vector.broadcast %179 : vector<1x32xf32> to vector<8x32xf32>
    %181 = arith.addf %178, %180 : vector<8x32xf32>
    %182 = arith.truncf %181 : vector<8x32xf32> to vector<8x32xbf16>
    %c0_59 = arith.constant 0 : index
    %c0_60 = arith.constant 0 : index
    %c0_61 = arith.constant 0 : index
    %183 = vector.load %arg11[%c0_59, %c0_60, %c0_61] : memref<1x32x128xbf16, #tpu.memory_space<vmem>>, vector<1x32x128xbf16>
    %184 = vector.shape_cast %183 : vector<1x32x128xbf16> to vector<32x128xbf16>
    %cst_62 = arith.constant dense<0.000000e+00> : vector<8x128xf32>
    %185 = tpu.matmul %182, %184, %cst_62 {dimension_numbers = #tpu.dot_dimension_numbers<[1], [0], [0], [1], [0, 0, 1, 1], [], []>} : vector<8x32xbf16>, vector<32x128xbf16>, vector<8x128xf32> -> vector<8x128xf32>
    %c0_63 = arith.constant 0 : index
    %c0_64 = arith.constant 0 : index
    %c0_65 = arith.constant 0 : index
    %186 = vector.load %arg12[%c0_63, %c0_64, %c0_65] : memref<1x1x128xbf16, #tpu.memory_space<vmem>>, vector<1x1x128xbf16>
    %187 = vector.shape_cast %186 : vector<1x1x128xbf16> to vector<128xbf16>
    %188 = arith.extf %187 : vector<128xbf16> to vector<128xf32>
    %189 = vector.shape_cast %188 : vector<128xf32> to vector<1x128xf32>
    %190 = vector.broadcast %189 : vector<1x128xf32> to vector<8x128xf32>
    %191 = arith.addf %185, %190 : vector<8x128xf32>
    %cst_66 = arith.constant 5.000000e-01 : f32
    %192 = vector.broadcast %cst_66 : f32 to vector<8x128xf32>
    %193 = arith.mulf %192, %191 : vector<8x128xf32>
    %cst_67 = arith.constant 0.707106769 : f32
    %194 = vector.broadcast %cst_67 : f32 to vector<8x128xf32>
    %195 = arith.mulf %191, %194 : vector<8x128xf32>
    %196 = math.erf %195 : vector<8x128xf32>
    %cst_68 = arith.constant 1.000000e+00 : f32
    %197 = vector.broadcast %cst_68 : f32 to vector<8x128xf32>
    %198 = arith.addf %197, %196 : vector<8x128xf32>
    %199 = arith.mulf %193, %198 : vector<8x128xf32>
    %200 = arith.truncf %199 : vector<8x128xf32> to vector<8x128xbf16>
    %c0_69 = arith.constant 0 : index
    %c0_70 = arith.constant 0 : index
    %c0_71 = arith.constant 0 : index
    %201 = vector.load %arg13[%c0_69, %c0_70, %c0_71] : memref<1x128x32xbf16, #tpu.memory_space<vmem>>, vector<1x128x32xbf16>
    %202 = vector.shape_cast %201 : vector<1x128x32xbf16> to vector<128x32xbf16>
    %cst_72 = arith.constant dense<0.000000e+00> : vector<8x32xf32>
    %203 = tpu.matmul %200, %202, %cst_72 {dimension_numbers = #tpu.dot_dimension_numbers<[1], [0], [0], [1], [0, 0, 1, 1], [], []>} : vector<8x128xbf16>, vector<128x32xbf16>, vector<8x32xf32> -> vector<8x32xf32>
    %c0_73 = arith.constant 0 : index
    %c0_74 = arith.constant 0 : index
    %c0_75 = arith.constant 0 : index
    %204 = vector.load %arg14[%c0_73, %c0_74, %c0_75] : memref<1x1x32xbf16, #tpu.memory_space<vmem>>, vector<1x1x32xbf16>
    %205 = vector.shape_cast %204 : vector<1x1x32xbf16> to vector<32xbf16>
    %206 = arith.extf %205 : vector<32xbf16> to vector<32xf32>
    %207 = vector.shape_cast %206 : vector<32xf32> to vector<1x32xf32>
    %208 = vector.broadcast %207 : vector<1x32xf32> to vector<8x32xf32>
    %209 = arith.addf %203, %208 : vector<8x32xf32>
    %210 = arith.addf %153, %209 : vector<8x32xf32>
    %211 = arith.truncf %210 : vector<8x32xf32> to vector<8x32xbf16>
    %c0_76 = arith.constant 0 : index
    %c0_77 = arith.constant 0 : index
    %c0_78 = arith.constant 0 : index
    %212 = vector.load %arg15[%c0_76, %c0_77, %c0_78] : memref<1x8x32xbf16, #tpu.memory_space<vmem>>, vector<1x8x32xbf16>
    %213 = vector.shape_cast %212 : vector<1x8x32xbf16> to vector<8x32xbf16>
    %214 = vector.shape_cast %211 : vector<8x32xbf16> to vector<1x8x32xbf16>
    tpu.vector_store %arg15[%c0_76, %c0_77, %c0_78], %214 {strides = array<i32>} : memref<1x8x32xbf16, #tpu.memory_space<vmem>>, vector<1x8x32xbf16>,
    return
  }
  func.func @transform_0(%arg0: i32, %arg1: i32) -> (i32, i32, i32) {
    %c0_i32 = arith.constant 0 : i32
    %c0_i32_0 = arith.constant 0 : i32
    %c0_i32_1 = arith.constant 0 : i32
    return %arg0, %c0_i32, %c0_i32_0 : i32, i32, i32
  }
  func.func @transform_1(%arg0: i32, %arg1: i32) -> (i32, i32, i32) {
    %c0_i32 = arith.constant 0 : i32
    %c0_i32_0 = arith.constant 0 : i32
    %c0_i32_1 = arith.constant 0 : i32
    return %arg1, %c0_i32, %c0_i32_0 : i32, i32, i32
  }
  func.func @transform_2(%arg0: i32, %arg1: i32) -> (i32, i32, i32) {
    %c0_i32 = arith.constant 0 : i32
    %c0_i32_0 = arith.constant 0 : i32
    %c0_i32_1 = arith.constant 0 : i32
    return %arg1, %c0_i32, %c0_i32_0 : i32, i32, i32
  }
  func.func @transform_3(%arg0: i32, %arg1: i32) -> (i32, i32, i32) {
    %c0_i32 = arith.constant 0 : i32
    %c0_i32_0 = arith.constant 0 : i32
    %c0_i32_1 = arith.constant 0 : i32
    return %arg1, %c0_i32, %c0_i32_0 : i32, i32, i32
  }
  func.func @transform_4(%arg0: i32, %arg1: i32) -> (i32, i32, i32) {
    %c0_i32 = arith.constant 0 : i32
    %c0_i32_0 = arith.constant 0 : i32
    %c0_i32_1 = arith.constant 0 : i32
    return %arg1, %c0_i32, %c0_i32_0 : i32, i32, i32
  }
  func.func @transform_5(%arg0: i32, %arg1: i32) -> (i32, i32, i32) {
    %c0_i32 = arith.constant 0 : i32
    %c0_i32_0 = arith.constant 0 : i32
    %c0_i32_1 = arith.constant 0 : i32
    return %arg1, %c0_i32, %c0_i32_0 : i32, i32, i32
  }
  func.func @transform_6(%arg0: i32, %arg1: i32) -> (i32, i32, i32) {
    %c0_i32 = arith.constant 0 : i32
    %c0_i32_0 = arith.constant 0 : i32
    %c0_i32_1 = arith.constant 0 : i32
    return %arg1, %c0_i32, %c0_i32_0 : i32, i32, i32
  }
  func.func @transform_7(%arg0: i32, %arg1: i32) -> (i32, i32, i32) {
    %c0_i32 = arith.constant 0 : i32
    %c0_i32_0 = arith.constant 0 : i32
    %c0_i32_1 = arith.constant 0 : i32
    return %arg1, %c0_i32, %c0_i32_0 : i32, i32, i32
  }
  func.func @transform_8(%arg0: i32, %arg1: i32) -> (i32, i32, i32) {
    %c0_i32 = arith.constant 0 : i32
    %c0_i32_0 = arith.constant 0 : i32
    %c0_i32_1 = arith.constant 0 : i32
    return %arg1, %c0_i32, %c0_i32_0 : i32, i32, i32
  }
  func.func @transform_9(%arg0: i32, %arg1: i32) -> (i32, i32, i32) {
    %c0_i32 = arith.constant 0 : i32
    %c0_i32_0 = arith.constant 0 : i32
    %c0_i32_1 = arith.constant 0 : i32
    return %arg1, %c0_i32, %c0_i32_0 : i32, i32, i32
  }
  func.func @transform_10(%arg0: i32, %arg1: i32) -> (i32, i32, i32) {
    %c0_i32 = arith.constant 0 : i32
    %c0_i32_0 = arith.constant 0 : i32
    %c0_i32_1 = arith.constant 0 : i32
    return %arg1, %c0_i32, %c0_i32_0 : i32, i32, i32
  }
  func.func @transform_11(%arg0: i32, %arg1: i32) -> (i32, i32, i32) {
    %c0_i32 = arith.constant 0 : i32
    %c0_i32_0 = arith.constant 0 : i32
    %c0_i32_1 = arith.constant 0 : i32
    return %arg1, %c0_i32, %c0_i32_0 : i32, i32, i32
  }
  func.func @transform_12(%arg0: i32, %arg1: i32) -> (i32, i32, i32) {
    %c0_i32 = arith.constant 0 : i32
    %c0_i32_0 = arith.constant 0 : i32
    %c0_i32_1 = arith.constant 0 : i32
    return %arg1, %c0_i32, %c0_i32_0 : i32, i32, i32
  }
  func.func @transform_13(%arg0: i32, %arg1: i32) -> (i32, i32, i32) {
    %c0_i32 = arith.constant 0 : i32
    %c0_i32_0 = arith.constant 0 : i32
    %c0_i32_1 = arith.constant 0 : i32
    return %arg0, %c0_i32, %c0_i32_0 : i32, i32, i32
  }
}

</mosaic_0001>

<bundles_post_ra>
// kernel: tpu_custom_call.1
= control target key start
LH: loop header
LB: loop body
LE: loop exit
PB: predicated region body
PF: predicated region fallthrough
CT: control target
= control target key end

     0   :  { %s2690_s0 = inlined_call_operand.vmem [shape: bf16[2,8,32], index: 0, kind: input, shape index: {}]   ;;  %s2691_s1 = inlined_call_operand.vmem [shape: bf16[2,1,32], index: 1, kind: input, shape index: {}]   ;;  %s2692_s2 = inlined_call_operand.vmem [shape: bf16[2,1,32], index: 2, kind: input, shape index: {}]   ;;  %s2693_s3 = inlined_call_operand.vmem [shape: bf16[2,32,96], index: 3, kind: input, shape index: {}]   ;;  %s2694_s4 = inlined_call_operand.vmem [shape: bf16[2,1,96], index: 4, kind: input, shape index: {}]   ;;  %s2695_s5 = inlined_call_operand.vmem [shape: bf16[2,32,32], index: 5, kind: input, shape index: {}]   ;;  %s2696_s6 = inlined_call_operand.vmem [shape: bf16[2,1,32], index: 6, kind: input, shape index: {}]   ;;  %s2697_s7 = inlined_call_operand.vmem [shape: bf16[2,1,32], index: 7, kind: input, shape index: {}]   ;;  %s2698_s8 = inlined_call_operand.vmem [shape: bf16[2,1,32], index: 8, kind: input, shape index: {}]   ;;  %s2699_s9 = inlined_call_operand.vmem [shape: bf16[2,32,128], index: 9, kind: input, shape index: {}]   ;;  %s2700_s10 = inlined_call_operand.vmem [shape: bf16[2,1,128], index: 10, kind: input, shape index: {}]   ;;  %s2701_s11 = inlined_call_operand.vmem [shape: bf16[2,128,32], index: 11, kind: input, shape index: {}]   ;;  %s2702_s12 = inlined_call_operand.vmem [shape: bf16[2,1,32], index: 12, kind: input, shape index: {}]   ;;  %s2703_s13 = inlined_call_operand.hbm [shape: bf16[2,8,32], index: 13, kind: output, shape index: {}]  }
   0x1   :  { %2719 = sst [smem:[#allocation18_spill]] %s2690_s0 }
   0x2   :  { %2720 = sst [smem:[#allocation19_spill]] %s2693_s3 }
   0x3   :  { %2721 = sst [smem:[#allocation20_spill]] %s2695_s5 }
   0x4   :  { %2722 = sst [smem:[#allocation21_spill]] %s2697_s7 }
   0x5   :  { %2723 = sst [smem:[#allocation22_spill]] %s2701_s11 }
   0x6   :  { %2724 = sst [smem:[#allocation23_spill]] %s2703_s13 }
   0x7   :  { %18 = vsyncpa [#allocation3], 0 }
   0x8   :  { %20 = vsyncpa [#allocation3 + $0x1], 0  ;;  %s2308_s25 = smov 0   ;;  %s2310_s26 = smov 0  }
   0x9   :  { %s2312_s27 = smov 0   ;;  %s2314_s28 = smov 0  }
   0xa   :  { %s2316_s29 = smov 0   ;;  %s2318_s30 = smov 0  }
   0xb   :  { %s2320_s14 = smov 0   ;;  %s2322_s15 = smov 0  }
   0xc LB: > { %2725 = sst [smem:[#allocation5_spill]] %s2193_s25  ;;  %s1813_s16 = sadd.s32 4294967295, %s2221_s15   ;;  %s2221_s15 = sphi %s2322_s15, %s26_s15   ;;  %s2217_s14 = sphi %s2320_s14, %s2767_s14   ;;  %s2213_s30 = sphi %s2318_s30, %s2766_s30   ;;  %s2209_s29 = sphi %s2316_s29, %s2765_s29   ;;  %s2205_s28 = sphi %s2314_s28, %s2764_s28   ;;  %s2201_s27 = sphi %s2312_s27, %s2763_s27   ;;  %s2197_s26 = sphi %s2310_s26, %s2762_s26   ;;  %s2193_s25 = sphi %s2308_s25, %s2761_s25  }
   0xd   : > { %2726 = sst [smem:[#allocation6_spill]] %s2197_s26  ;;  %s1814_s17 = sadd.s32 4294967294, %s2221_s15  }
   0xe   : > { %2727 = sst [smem:[#allocation7_spill]] %s2201_s27  ;;  %s35_s18 = sadd.s32 1, %s2213_s30 }
   0xf   : > { %2728 = sst [smem:[#allocation8_spill]] %s2205_s28  ;;  %p36_p0 = scmp.ge.s32.totalorder %s35_s18, 2 }
  0x10   : > { %2729 = sst [smem:[#allocation9_spill]] %s2209_s29  ;;  %s38_s19 = sadd.s32 1, %s2217_s14 }
  0x11   : > { %2730 = sst [smem:[#allocation10_spill]] %s2213_s30  ;;  %p393_p1 = scmp.ne.s32.totalorder %s2201_s27, %s2197_s26 }
  0x12   : > { %2731 = sst [smem:[#allocation11_spill]] %s2217_s14  ;;  %p394_p2 = scmp.eq.s32.totalorder %s1813_s16, 3 }
  0x13   : > { %2732 = sst [smem:[#allocation12_spill]] %s2221_s15  ;;  %s2769_s18 = smov (%p36_p0, %s35_s18), 0 }
  0x14   : > { %2733 = sst [smem:[#allocation13_spill]] %s2769_s18  ;;  %s2771_s19 = smov (!%p36_p0, %s38_s19), %s2217_s14 }
  0x15   : > { %p2357_p3 = por %p394_p2, %p393_p1  ;;  %p399_p4 = scmp.ne.s32.totalorder %s2197_s26, %s2193_s25 }
  0x16   : > { %p40_p5 = scmp.ge.s32.totalorder %s2771_s19, 2  ;;  %p400_p6 = scmp.eq.s32.totalorder %s1814_s17, 3 }
  0x17   : > { %s2734_s20 = scalar_select %p2357_p3, 1, 0 }
  0x18   : > { %p1817_p7 = scmp.ge.s32.totalorder %s2221_s15, 1  ;;  %p505_p8 = scmp.lt.s32.totalorder %s2221_s15, 5 }
  0x19   : > { %2735 = sst [smem:[#allocation14_spill]] %s2734_s20  ;;  %s2773_s19 = smov (%p40_p5, %s2771_s19), 0 }
  0x1a   : > { %2736 = sst [smem:[#allocation15_spill]] %s2773_s19  ;;  %p2367_p9 = por %p400_p6, %p399_p4 }
  0x1b   : > { %p506_p10 = pnand %p1817_p7, %p505_p8  ;;  %s380_s22 = ssub.s32 %s2217_s14, %s2773_s19 }
  0x1c   : > { %s2737_s21 = scalar_select %p2367_p9, 1, 0 }
  0x1d   : > { %s383_s23 = sadd.s32 1, %s2201_s27  ;;  %p381_p11 = scmp.eq.s32.totalorder %s380_s22, 0 }
  0x1e   : > { %2738 = sst [smem:[#allocation16_spill]] %s2737_s21  ;;  %509 = sbr.rel (%p506_p10) target bundleno = 3573 (0xdf5), region = 72 }
  0x1f   : > { %s2375_s24 = scalar_select %p381_p11, %s2201_s27, %s383_s23  }
  0x20   : > { %s2707_s16 = sand.u32 (!%p506_p10), 1, %s2197_s26   ;;  %p592_p12 = scmp.lt.s32.totalorder (!%p506_p10), %s2209_s29, 1 }
  0x21   : > { %2739 = sst [smem:[#allocation17_spill]] %s2375_s24  ;;  %s1818_s17 = sshll.u32 (!%p506_p10), %s2707_s16, 2 }
  0x22   : > { %p596_p13 = scmp.lt.s32.totalorder (!%p506_p10), %s2205_s28, 1  ;;  %s2740_s0 = sld [smem:[#allocation18_spill]] (!%p506_p10) }
  0x23   : > { %s593_s18 = scalar_select %p592_p12, %s2209_s29, 1 }
  0x24   : > { %s2384_s30 = scalar_select %p596_p13, %s2205_s28, 1 }
  0x25   : > { %s1819_s22 = sshll.u32 %s593_s18, 2  ;;  %s2741_s3 = sld [smem:[#allocation19_spill]] }
  0x26   : > { %s1859_s13 = sshll.u32 %s2384_s30, 4  ;;  %s2742_s5 = sld [smem:[#allocation20_spill]] }
  0x27   : > { %s2427_s18 = scalar_lea.vmem %s2699_s9, %s1859_s13  ;;  %s631_s11 = scalar_lea.vmem %s2700_s10, %s2384_s30 }
  0x28   : > { %s595_s14 = scalar_lea.vmem %s2740_s0, %s1819_s22  ;;  %s623_s0 = scalar_lea.vmem %s2698_s8, %s2384_s30 }
  0x29   : > { %s639_s25 = scalar_lea.vmem %s2702_s12, %s2384_s30  ;;  %s2744_s27 = sld [smem:[#allocation22_spill]] }
  0x2a   : > { %s2443_s26 = scalar_lea.vmem [#allocation2], %s1818_s17  ;;  %s2745_s20 = sld [smem:[#allocation8_spill]] }
  0x2b   : > { %s2401_s29 = scalar_lea.vmem %s2741_s3, %s1859_s13 }
  0x2c   : > { %s2410_s23 = scalar_lea.vmem %s2742_s5, %s1859_s13  ;;  %s1862_s5 = sshll.u32 %s2384_s30, 6 }
  0x2f   : > { %s2441_s7 = scalar_lea.vmem %s2744_s27, %s1862_s5 }
  0x30   : > { %p1828_p0 = scmp.ne.s32.totalorder %s2745_s20, 0 }
  0x32   : > { %644 = sbr.rel (%p1828_p0) target bundleno = 57 (0x39), region = 76 }
  0x37   : > { %v645_v0 = vld [vmem:[%s595_s14] sm:$0xf]  ;;  %vm646_vm0 = vcmask 257024  }
  0x38   : > { %647 = vst.msk [vmem:[%s2443_s26] sm:$0xf] %vm646_vm0, %v645_v0 }
  0x39 PF: > { %vm660_vm1 = vcmask 261120   ;;  %v2095_v9 = vld [vmem:[%s2401_s29 + $0x8] sm:$0xff]   ;;  %v2223_v10 = vmov 0.0   ;;  %vm2224_vm2 = vmmov 0   ;;  %v2096_v11 = vld [vmem:[%s2401_s29] sm:$0xff]   ;;  %v650_v15 = vlaneseq  ;;  %s2746_s13 = scalar_lea.vmem %s2691_s1, %s2384_s30  ;;  %s2747_s14 = scalar_lea.vmem %s2692_s2, %s2384_s30 }
  0x3a   : > { %1902 = vmatprep.subr.bf16.mxu1 %v2223_v10  ;;  %1906 = vmatprep.mubr.msk.bf16.mxu1 %vm2224_vm2, %v2223_v10  ;;  %v656_v17 = vld [vmem:[%s2746_s13] sm:$0x1]  ;;  %s2748_s19 = scalar_lea.vmem %s2694_s4, %s2384_s30  ;;  %s2225_s22 = smov 120   ;;  %vm765_vm3 = vcmask 64512   ;;  %v2228_v44 = vmov -1e+30  }
  0x3b   : > { %1903 = vmatpush3.bf16.msra.mxu1 %v2095_v9  ;;  %1928 = vmatprep.subr.bf16.mxu0 %v2223_v10  ;;  %v651_v16 = vshrl.u32 %v650_v15, 7  ;;  %v658_v18 = vld [vmem:[%s2747_s14] sm:$0x1]  ;;  %v657_v19 = vunpack.c.l.bf16 %v656_v17  ;;  %s2226_s24 = smov 96   ;;  %s2227_s16 = smov 88   ;;  %v653_v43 = vand.u32 127, %v650_v15 }
  0x3c   : > { %1904 = vmatprep.subr.bf16.mxu1 %v2223_v10  ;;  %1930 = vmatprep.mubr.msk.bf16.mxu0 %vm2224_vm2, %v2223_v10  ;;  %v659_v21 = vunpack.c.l.bf16 %v658_v18  ;;  %v690_v29 = vld [vmem:[%s2748_s19] sm:$0x1]  ;;  %s2229_s15 = smov 64   ;;  %vm829_vm5 = vcmask 1043456   ;;  %s2230_s21 = smov 56   ;;  %vm1607_vm6 = vcmask 257024  }
  0x3d   : > { %v2474_v20 = vsub.s32 0, %v651_v16  ;;  %v691_v30 = vunpack.c.l.bf16 %v690_v29  ;;  %vm654_vm4 = vcmp.le.s32.totalorder %v653_v43, %v651_v16  ;;  %s2231_s20 = smov 80   ;;  %s2232_s3 = smov 112   ;;  %v752_v29 = vld [vmem:[%s2410_s23 + $0x4] sm:$0xf] }
  0x3e   : > { %v2503_v45 = vsel %vm654_vm4, 0.0, %v2228_v44  ;;  %s2233_s5 = smov 48   ;;  %s2749_s29 = scalar_lea.vmem %s2696_s6, %s2384_s30 }
  0x3f   : > { %v648_v1 = vld [vmem:[%s2443_s26] sm:$0xf]  ;;  %1905 = vmatpush3.bf16.msra.mxu1 %v2096_v11  ;;  %v678_v22 = vrot.slane %v657_v19, %v2474_v20  ;;  %v683_v25 = vrot.slane %v659_v21, %v2474_v20  ;;  %v695_v31 = vrot.slane %v691_v30, %v2474_v20  ;;  %v1036_v30 = vsel %vm829_vm5, %v752_v29, 0  ;;  %s2234_s14 = smov 72   ;;  %s2235_s17 = smov 104  }
  0x40   : > { %v2448_v2 = vunpack.c.l.bf16 %v648_v1  ;;  %1910 = vmatprep.subr.bf16.mxu1 %v2223_v10  ;;  %s2236_s28 = smov 40   ;;  %s1623_s13 = sshll.u32 %s2443_s26, 4  ;;  %s1624_s13 = int_to_ptr.vmem [resolvable:$true] %s1623_s13 }
  0x41   : > { %s2237_s19 = smov [#allocation2]  }
  0x42   : > { %v661_v3 = vsel %vm660_vm1, %v2448_v2, 0.0 }
  0x43   : > { %662 = vadd.xlane.f32.xlu0 %v661_v3 }
  0xcc   : > { %v663_v4 = vpop.xlane.xlu0 %662 }
  0xcd   : > { %v665_v5 = vmul.f32 0.03125, %v663_v4 }
  0xcf   : > { %v666_v6 = vsub.f32 %v2448_v2, %v665_v5 }
  0xd1   : > { %v667_v7 = vmul.f32 %v666_v6, %v666_v6 }
  0xd3   : > { %v668_v8 = vsel %vm660_vm1, %v667_v7, 0.0 }
  0xd4   : > { %669 = vadd.xlane.f32.xlu0 %v668_v8 }
 0x15d   : > { %v670_v12 = vpop.xlane.xlu0 %669 }
 0x15e   : > { %v671_v13 = vmul.f32 0.03125, %v670_v12  ;;  %v751_v12 = vld [vmem:[%s2410_s23] sm:$0xf] }
 0x160   : > { %v672_v14 = vadd.f32 1e-05, %v671_v13  ;;  %v878_v13 = vsel %vm829_vm5, %v751_v12, 0 }
 0x162   : > { %2107 = vrsqrt.f32 %v672_v14 }
 0x16f   : > { %v2108_v23 = vpop.eup %2107 }
 0x170   : > { %v674_v24 = vmul.f32 %v2108_v23, %v666_v6 }
 0x172   : > { %v679_v26 = vmul.f32 %v678_v22, %v674_v24 }
 0x174   : > { %v684_v27 = vadd.f32 %v683_v25, %v679_v26 }
 0x176   : > { %v685_v28 = vpack.c.bf16 %v684_v27, %v684_v27 }
 0x178   : > { %1907 = vmatmul.mubr.msk.bf16.vlgmr.msra.gmra.mxu1 %vm660_vm1, %v685_v28 }
 0x179   : > { %1912 = vmatprep.mubr.msk.bf16.mxu1 %vm2224_vm2, %v2223_v10 }
 0x238   : > { %v745_v32 = vpop.f32.mrf.mxu1 }
 0x239   : > { %v746_v33 = vadd.f32 %v745_v32, %v695_v31 }
 0x23a   : > { %v1908_v34 = vpop.f32.mrf.mxu1 }
 0x23b   : > { %v2487_v35 = vpack.c.bf16 %v746_v33, %v746_v33 }
 0x23c   : > { %v748_v36 = vpop.f32.mrf.mxu1 }
 0x23d   : > { %921 = vrot.lane.b32.xlu0 %v2487_v35, %s2225_s22  ;;  %763 = vrot.lane.b32.xlu1 %v2487_v35, %s2226_s24  ;;  %s2750_s22 = sld [smem:[#allocation21_spill]] }
 0x23e   : > { %v1909_v37 = vpop.f32.mrf.mxu1 }
 0x241   : > { %923 = vrot.lane.b32.xlu1 %v2487_v35, %s2227_s16 }
 0x2af   : > { %v764_v38 = vpop.permute.xlu1 %763  ;;  %v922_v42 = vpop.permute.xlu0 %921 }
 0x2b0   : > { %v770_v39 = vsel %vm765_vm3, %v764_v38, 0 }
 0x2b1   : > { %1911 = vmatpush3.bf16.xpose.msra.mxu1 %v770_v39 }
 0x2b2   : > { %1916 = vmatprep.subr.bf16.mxu1 %v2223_v10 }
 0x2b3   : > { %v924_v40 = vpop.permute.xlu1 %923 }
 0x2b4   : > { %v929_v41 = vsel %vm765_vm3, %v924_v40, 0 }
 0x2b5   : > { %1929 = vmatpush3.bf16.xpose.msra.mxu0 %v929_v41 }
 0x2b6   : > { %1940 = vmatprep.subr.bf16.mxu0 %v2223_v10 }
 0x2b8   : > { %1913 = vmatmul.mubr.msk.bf16.vlgmr.msra.gmra.mxu1 %vm765_vm3, %v2487_v35 }
 0x2b9   : > { %1918 = vmatprep.mubr.msk.bf16.mxu1 %vm2224_vm2, %v2223_v10 }
 0x2bc   : > { %1931 = vmatmul.mubr.msk.bf16.vlgmr.msra.gmra.mxu0 %vm765_vm3, %v922_v42 }
 0x2bd   : > { %1942 = vmatprep.mubr.msk.bf16.mxu0 %vm2224_vm2, %v2223_v10  ;;  %1941 = vmatpush3.bf16.msra.mxu0 %v1036_v30 }
 0x2be   : > { %1952 = vmatprep.subr.bf16.mxu0 %v2223_v10 }
 0x378   : > { %v806_v46 = vpop.f32.mrf.mxu1 }
 0x379   : > { %v807_v47 = vadd.f32 %v806_v46, %v2503_v45 }
 0x37a   : > { %v1914_v48 = vpop.f32.mrf.mxu1 }
 0x37b   : > { %v812_v49 = vsel %vm765_vm3, %v807_v47, -inf }
 0x37c   : > { %v965_v50 = vpop.f32.mrf.mxu0  ;;  %813 = vmax.xlane.f32.xlu1 %v812_v49  ;;  %v809_v51 = vpop.f32.mrf.mxu1 }
 0x37d   : > { %v966_v62 = vadd.f32 %v965_v50, %v2503_v45 }
 0x37e   : > { %v1915_v52 = vpop.f32.mrf.mxu1  ;;  %v1932_v53 = vpop.f32.mrf.mxu0 }
 0x37f   : > { %v971_v0 = vsel %vm765_vm3, %v966_v62, -inf }
 0x380   : > { %v968_v54 = vpop.f32.mrf.mxu0 }
 0x382   : > { %v1933_v55 = vpop.f32.mrf.mxu0 }
 0x383   : > { %v755_v55 = vld [vmem:[%s2749_s29] sm:$0x1] }
 0x38d   : > { %824 = vrot.lane.b32.xlu1 %v2487_v35, %s2229_s15 }
 0x405   : > { %v814_v56 = vpop.xlane.xlu1 %813 }
 0x406   : > { %v815_v57 = vsub.f32 %v807_v47, %v814_v56  ;;  %v756_v56 = vunpack.c.l.bf16 %v755_v55 }
 0x408   : > { %v816_v58 = vmul.f32 1.442695, %v815_v57  ;;  %v760_v57 = vrot.slane %v756_v56, %v2474_v20 }
 0x409   : > { %v825_v59 = vpop.permute.xlu1 %824 }
 0x40a   : > { %2109 = vpow2.f32 %v816_v58  ;;  %v831_v60 = vsel %vm829_vm5, %v825_v59, 0 }
 0x40b   : > { %1917 = vmatpush3.bf16.msra.mxu1 %v831_v60 }
 0x40c   : > { %1922 = vmatprep.subr.bf16.mxu1 %v2223_v10 }
 0x417   : > { %v2110_v61 = vpop.eup %2109 }
 0x418   : > { %v818_v63 = vsel %vm765_vm3, %v2110_v61, 0.0 }
 0x419   : > { %819 = vadd.xlane.f32.xlu0 %v818_v63 }
 0x41d   : > { %972 = vmax.xlane.f32.xlu0 %v971_v0 }
 0x433   : > { %983 = vrot.lane.b32.xlu0 %v2487_v35, %s2230_s21  ;;  %s2752_s21 = sld [smem:[#allocation9_spill]] }
 0x437   : > { %1081 = vrot.lane.b32.xlu0 %v2487_v35, %s2231_s20  ;;  %s2753_s20 = sld [smem:[#allocation6_spill]] }
 0x43b   : > { %1079 = vrot.lane.b32.xlu0 %v2487_v35, %s2232_s3 }
 0x4a2   : > { %v820_v1 = vpop.xlane.xlu0 %819 }
 0x4a3   : > { %2111 = vrcp.f32 %v820_v1 }
 0x4a6   : > { %v973_v3 = vpop.xlane.xlu0 %972 }
 0x4a7   : > { %v974_v4 = vsub.f32 %v966_v62, %v973_v3 }
 0x4a9   : > { %v975_v5 = vmul.f32 1.442695, %v974_v4 }
 0x4aa   : > { %v984_v15 = vpop.permute.xlu0 %983 }
 0x4ab   : > { %2113 = vpow2.f32 %v975_v5  ;;  %v989_v21 = vsel %vm829_vm5, %v984_v15, 0 }
 0x4ae   : > { %v1082_v25 = vpop.permute.xlu0 %1081 }
 0x4af   : > { %v1087_v27 = vsel %vm765_vm3, %v1082_v25, 0 }
 0x4b0   : > { %v2112_v6 = vpop.eup %2111 }
 0x4b1   : > { %v822_v7 = vmul.f32 %v2112_v6, %v2110_v61 }
 0x4b2   : > { %v1080_v28 = vpop.permute.xlu0 %1079 }
 0x4b3   : > { %v823_v8 = vpack.c.bf16 %v822_v7, %v822_v7 }
 0x4b5   : > { %1919 = vmatmul.mubr.msk.bf16.vlgmr.msra.gmra.mxu1 %vm765_vm3, %v823_v8  ;;  %v753_v8 = vld [vmem:[%s2410_s23 + $0x8] sm:$0xf] }
 0x4b6   : > { %1924 = vmatprep.mubr.msk.bf16.mxu1 %vm2224_vm2, %v2223_v10  ;;  %1923 = vmatpush3.bf16.msra.mxu1 %v878_v13 }
 0x4b7   : > { %1934 = vmatprep.subr.bf16.mxu1 %v2223_v10 }
 0x4b8   : > { %v2114_v9 = vpop.eup %2113 }
 0x4b9   : > { %v977_v11 = vsel %vm765_vm3, %v2114_v9, 0.0 }
 0x4ba   : > { %978 = vadd.xlane.f32.xlu1 %v977_v11 }
 0x4cb   : > { %1141 = vrot.lane.b32.xlu1 %v2487_v35, %s2233_s5  ;;  %s1856_s5 = sshll.u32 %s2752_s21, 6 }
 0x543   : > { %v979_v14 = vpop.xlane.xlu1 %978 }
 0x544   : > { %2115 = vrcp.f32 %v979_v14 }
 0x547   : > { %v1142_v36 = vpop.permute.xlu1 %1141 }
 0x548   : > { %v1147_v40 = vsel %vm829_vm5, %v1142_v36, 0 }
 0x551   : > { %v2116_v18 = vpop.eup %2115 }
 0x552   : > { %v981_v23 = vmul.f32 %v2116_v18, %v2114_v9  ;;  %v1194_v9 = vsel %vm829_vm5, %v753_v8, 0 }
 0x554   : > { %v982_v26 = vpack.c.bf16 %v981_v23, %v981_v23 }
 0x575   : > { %v867_v16 = vpop.f32.mrf.mxu1 }
 0x576   : > { %v873_v17 = vpack.c.bf16 %v867_v16, %v867_v16 }
 0x577   : > { %v1920_v19 = vpop.f32.mrf.mxu1 }
 0x578   : > { %1925 = vmatmul.mubr.msk.bf16.vlgmr.msra.gmra.mxu1 %vm765_vm3, %v873_v17 }
 0x579   : > { %1935 = vmatpush3.bf16.msra.mxu1 %v989_v21  ;;  %v870_v22 = vpop.f32.mrf.mxu1  ;;  %1936 = vmatprep.mubr.msk.bf16.mxu1 %vm2224_vm2, %v2223_v10 }
 0x57a   : > { %1946 = vmatprep.subr.bf16.mxu1 %v2223_v10 }
 0x57b   : > { %v1921_v24 = vpop.f32.mrf.mxu1 }
 0x580   : > { %1937 = vmatmul.mubr.msk.bf16.vlgmr.msra.gmra.mxu1 %vm765_vm3, %v982_v26 }
 0x581   : > { %1947 = vmatpush3.bf16.xpose.msra.mxu1 %v1087_v27  ;;  %1948 = vmatprep.mubr.msk.bf16.mxu1 %vm2224_vm2, %v2223_v10 }
 0x582   : > { %1958 = vmatprep.subr.bf16.mxu1 %v2223_v10 }
 0x588   : > { %1949 = vmatmul.mubr.msk.bf16.vlgmr.msra.gmra.mxu1 %vm765_vm3, %v1080_v28 }
 0x589   : > { %1960 = vmatprep.mubr.msk.bf16.mxu1 %vm2224_vm2, %v2223_v10  ;;  %1959 = vmatpush3.bf16.msra.mxu1 %v1194_v9 }
 0x58a   : > { %1970 = vmatprep.subr.bf16.mxu1 %v2223_v10 }
 0x638   : > { %v914_v31 = vpop.f32.mrf.mxu1 }
 0x639   : > { %v920_v58 = vadd.f32 %v914_v31, %v760_v57 }
 0x63a   : > { %v1926_v32 = vpop.f32.mrf.mxu1 }
 0x63b   : > { %v754_v32 = vld [vmem:[%s2410_s23 + $0xc] sm:$0xf]  ;;  %s2129_s23 = scalar_lea.vmem %s1624_s13, 64 }
 0x63c   : > { %v917_v33 = vpop.f32.mrf.mxu1  ;;  %p2130_p1 = scmp.ne.s32.totalorder %s1624_s13, %s2129_s23 }
 0x63e   : > { %v1927_v34 = vpop.f32.mrf.mxu1  ;;  %p2131_p2 = pnand %p2130_p1, %p2357_p3 }
 0x640   : > { %v1025_v37 = vpop.f32.mrf.mxu1  ;;  %p2132_p4 = pneg %p2131_p2 }
 0x641   : > { %v1031_v38 = vpack.c.bf16 %v1025_v37, %v1025_v37 }
 0x642   : > { %v1938_v39 = vpop.f32.mrf.mxu1 }
 0x643   : > { %1943 = vmatmul.mubr.msk.bf16.vlgmr.msra.gmra.mxu0 %vm765_vm3, %v1031_v38 }
 0x644   : > { %1953 = vmatpush3.bf16.msra.mxu0 %v1147_v40  ;;  %v1028_v41 = vpop.f32.mrf.mxu1  ;;  %1954 = vmatprep.mubr.msk.bf16.mxu0 %vm2224_vm2, %v2223_v10 }
 0x645   : > { %1964 = vmatprep.subr.bf16.mxu0 %v2223_v10 }
 0x646   : > { %v1939_v42 = vpop.f32.mrf.mxu1 }
 0x648   : > { %v1123_v43 = vpop.f32.mrf.mxu1 }
 0x649   : > { %v1124_v44 = vadd.f32 %v1123_v43, %v2503_v45 }
 0x64a   : > { %v1950_v46 = vpop.f32.mrf.mxu1 }
 0x64b   : > { %v1129_v47 = vsel %vm765_vm3, %v1124_v44, -inf }
 0x64c   : > { %1130 = vmax.xlane.f32.xlu0 %v1129_v47  ;;  %v1126_v48 = vpop.f32.mrf.mxu1 }
 0x64e   : > { %v1951_v49 = vpop.f32.mrf.mxu1 }
 0x6d5   : > { %v1131_v50 = vpop.xlane.xlu0 %1130 }
 0x6d6   : > { %v1132_v51 = vsub.f32 %v1124_v44, %v1131_v50 }
 0x6d8   : > { %v1133_v52 = vmul.f32 1.442695, %v1132_v51 }
 0x6da   : > { %2117 = vpow2.f32 %v1133_v52 }
 0x6e7   : > { %v2118_v53 = vpop.eup %2117 }
 0x6e8   : > { %v1135_v54 = vsel %vm765_vm3, %v2118_v53, 0.0 }
 0x6e9   : > { %1136 = vadd.xlane.f32.xlu1 %v1135_v54 }
 0x6fa   : > { %1239 = vrot.lane.b32.xlu1 %v2487_v35, %s2234_s14 }
 0x6fe   : > { %1237 = vrot.lane.b32.xlu1 %v2487_v35, %s2235_s17 }
 0x703   : > { %v1072_v59 = vpop.f32.mrf.mxu0 }
 0x704   : > { %v1078_v60 = vadd.f32 %v1072_v59, %v920_v58  ;;  %v2097_v58 = vld [vmem:[%s2427_s18 + $0x8] sm:$0xff]   ;;  %v2099_v59 = vld [vmem:[%s2441_s7 + $0x38] sm:$0xff]  }
 0x705   : > { %v1944_v61 = vpop.f32.mrf.mxu0 }
 0x707   : > { %v1075_v62 = vpop.f32.mrf.mxu0 }
 0x709   : > { %v1945_v63 = vpop.f32.mrf.mxu0 }
 0x772   : > { %v1137_v0 = vpop.xlane.xlu1 %1136 }
 0x773   : > { %2119 = vrcp.f32 %v1137_v0 }
 0x776   : > { %v1240_v4 = vpop.permute.xlu1 %1239 }
 0x777   : > { %v1245_v6 = vsel %vm765_vm3, %v1240_v4, 0 }
 0x77a   : > { %v1238_v7 = vpop.permute.xlu1 %1237 }
 0x780   : > { %v2120_v1 = vpop.eup %2119 }
 0x781   : > { %v1139_v3 = vmul.f32 %v2120_v1, %v2118_v53  ;;  %v1398_v1 = vld [vmem:[%s623_s0] sm:$0x1] }
 0x782   : > { %v1399_v4 = vunpack.c.l.bf16 %v1398_v1 }
 0x783   : > { %v1140_v5 = vpack.c.bf16 %v1139_v3, %v1139_v3 }
 0x784   : > { %v1421_v8 = vrot.slane %v1399_v4, %v2474_v20 }
 0x785   : > { %1955 = vmatmul.mubr.msk.bf16.vlgmr.msra.gmra.mxu0 %vm765_vm3, %v1140_v5 }
 0x786   : > { %1965 = vmatpush3.bf16.xpose.msra.mxu0 %v1245_v6  ;;  %1966 = vmatprep.mubr.msk.bf16.mxu0 %vm2224_vm2, %v2223_v10 }
 0x787   : > { %1976 = vmatprep.subr.bf16.mxu0 %v2223_v10 }
 0x78d   : > { %1967 = vmatmul.mubr.msk.bf16.vlgmr.msra.gmra.mxu0 %vm765_vm3, %v1238_v7 }
 0x78e   : > { %1978 = vmatprep.mubr.msk.bf16.mxu0 %vm2224_vm2, %v2223_v10 }
 0x845   : > { %v1183_v11 = vpop.f32.mrf.mxu0 }
 0x846   : > { %v1189_v12 = vpack.c.bf16 %v1183_v11, %v1183_v11 }
 0x847   : > { %v1956_v13 = vpop.f32.mrf.mxu0 }
 0x848   : > { %1961 = vmatmul.mubr.msk.bf16.vlgmr.msra.gmra.mxu1 %vm765_vm3, %v1189_v12  ;;  %v2101_v13 = vld [vmem:[%s2441_s7 + $0x28] sm:$0xff]  }
 0x849   : > { %v1186_v14 = vpop.f32.mrf.mxu0  ;;  %1972 = vmatprep.mubr.msk.bf16.mxu1 %vm2224_vm2, %v2223_v10 }
 0x84a   : > { %v2102_v14 = vld [vmem:[%s2441_s7 + $0x20] sm:$0xff]  }
 0x84b   : > { %v1957_v15 = vpop.f32.mrf.mxu0 }
 0x84c   : > { %v2103_v15 = vld [vmem:[%s2441_s7 + $0x18] sm:$0xff]  }
 0x84d   : > { %v1281_v16 = vpop.f32.mrf.mxu0 }
 0x84e   : > { %v1282_v17 = vadd.f32 %v1281_v16, %v2503_v45  ;;  %v2104_v16 = vld [vmem:[%s2441_s7 + $0x10] sm:$0xff]  }
 0x84f   : > { %v1968_v18 = vpop.f32.mrf.mxu0 }
 0x850   : > { %v1287_v19 = vsel %vm765_vm3, %v1282_v17, -inf  ;;  %v2106_v18 = vld [vmem:[%s2441_s7] sm:$0xff]  }
 0x851   : > { %1288 = vmax.xlane.f32.xlu0 %v1287_v19  ;;  %v1284_v21 = vpop.f32.mrf.mxu0  ;;  %v1428_v19 = vld [vmem:[%s631_s11] sm:$0x1] }
 0x852   : > { %v1429_v21 = vunpack.c.l.bf16 %v1428_v19 }
 0x853   : > { %v1969_v22 = vpop.f32.mrf.mxu0 }
 0x854   : > { %v1433_v22 = vrot.slane %v1429_v21, %v2474_v20 }
 0x867   : > { %1299 = vrot.lane.b32.xlu0 %v2487_v35, %s2236_s28  ;;  %v1352_v35 = vsel %vm829_vm5, %v754_v32, 0  ;;  %v1511_v32 = vld [vmem:[%s639_s25] sm:$0x1]  ;;  %s2757_s25 = sand.u32 1, %s2753_s20  }
 0x868   : > { %1977 = vmatpush3.bf16.msra.mxu0 %v1352_v35  ;;  %v1512_v35 = vunpack.c.l.bf16 %v1511_v32  ;;  %s1610_s28 = scalar_lea.sflag [#allocation3], %s2757_s25 }
 0x869   : > { %1990 = vmatprep.subr.bf16.mxu0 %v2223_v10 }
 0x8da   : > { %v1289_v23 = vpop.xlane.xlu0 %1288 }
 0x8db   : > { %v1290_v24 = vsub.f32 %v1282_v17, %v1289_v23  ;;  %v2105_v17 = vld [vmem:[%s2441_s7 + $0x8] sm:$0xff]  }
 0x8dd   : > { %v1291_v25 = vmul.f32 1.442695, %v1290_v24 }
 0x8de   : > { %v1300_v26 = vpop.permute.xlu0 %1299 }
 0x8df   : > { %2121 = vpow2.f32 %v1291_v25  ;;  %v1305_v27 = vsel %vm829_vm5, %v1300_v26, 0 }
 0x8e0   : > { %1971 = vmatpush3.bf16.msra.mxu1 %v1305_v27 }
 0x8e1   : > { %1982 = vmatprep.subr.bf16.mxu1 %v2223_v10 }
 0x8ec   : > { %v2122_v45 = vpop.eup %2121 }
 0x8ed   : > { %v1293_v28 = vsel %vm765_vm3, %v2122_v45, 0.0 }
 0x8ee   : > { %1294 = vadd.xlane.f32.xlu1 %v1293_v28 }
 0x908   : > { %v1230_v29 = vpop.f32.mrf.mxu1 }
 0x909   : > { %v1236_v30 = vadd.f32 %v1230_v29, %v1078_v60  ;;  %v2100_v60 = vld [vmem:[%s2441_s7 + $0x30] sm:$0xff]  }
 0x90a   : > { %v1962_v31 = vpop.f32.mrf.mxu1 }
 0x90c   : > { %v1233_v33 = vpop.f32.mrf.mxu1 }
 0x90d   : > { %v1516_v33 = vrot.slane %v1512_v35, %v2474_v20 }
 0x90e   : > { %v1963_v34 = vpop.f32.mrf.mxu1 }
 0x977   : > { %v1295_v36 = vpop.xlane.xlu1 %1294 }
 0x978   : > { %2123 = vrcp.f32 %v1295_v36 }
 0x985   : > { %v2124_v37 = vpop.eup %2123 }
 0x986   : > { %v1297_v38 = vmul.f32 %v2124_v37, %v2122_v45 }
 0x988   : > { %v1298_v39 = vpack.c.bf16 %v1297_v38, %v1297_v38 }
 0x98a   : > { %1973 = vmatmul.mubr.msk.bf16.vlgmr.msra.gmra.mxu1 %vm765_vm3, %v1298_v39 }
 0x98b   : > { %1986 = vmatprep.mubr.msk.bf16.mxu1 %vm2224_vm2, %v2223_v10  ;;  %1983 = vmatpush3.bf16.msra.mxu1 %v2097_v58 }
 0x98c   : > { %1984 = vmatprep.subr.bf16.mxu1 %v2223_v10 }
 0xa4a   : > { %v1341_v40 = vpop.f32.mrf.mxu1 }
 0xa4b   : > { %v1347_v41 = vpack.c.bf16 %v1341_v40, %v1341_v40 }
 0xa4c   : > { %v1974_v42 = vpop.f32.mrf.mxu1 }
 0xa4d   : > { %1979 = vmatmul.mubr.msk.bf16.vlgmr.msra.gmra.mxu0 %vm765_vm3, %v1347_v41 }
 0xa4e   : > { %v1344_v43 = vpop.f32.mrf.mxu1  ;;  %2006 = vmatprep.mubr.msk.bf16.mxu0 %vm2224_vm2, %v2223_v10  ;;  %1991 = vmatpush3.bf16.msra.mxu0 %v2099_v59 }
 0xa4f   : > { %1992 = vmatprep.subr.bf16.mxu0 %v2223_v10 }
 0xa50   : > { %v1975_v44 = vpop.f32.mrf.mxu1 }
 0xa52   : > { %1993 = vmatpush3.bf16.msra.mxu0 %v2100_v60 }
 0xa53   : > { %1994 = vmatprep.subr.bf16.mxu0 %v2223_v10 }
 0xa56   : > { %1995 = vmatpush3.bf16.msra.mxu0 %v2101_v13 }
 0xa57   : > { %1996 = vmatprep.subr.bf16.mxu0 %v2223_v10 }
 0xa5a   : > { %1997 = vmatpush3.bf16.msra.mxu0 %v2102_v14 }
 0xa5b   : > { %1998 = vmatprep.subr.bf16.mxu0 %v2223_v10 }
 0xa5e   : > { %1999 = vmatpush3.bf16.msra.mxu0 %v2103_v15 }
 0xa5f   : > { %2000 = vmatprep.subr.bf16.mxu0 %v2223_v10 }
 0xa62   : > { %2001 = vmatpush3.bf16.msra.mxu0 %v2104_v16 }
 0xa63   : > { %2002 = vmatprep.subr.bf16.mxu0 %v2223_v10 }
 0xa66   : > { %2003 = vmatpush3.bf16.msra.mxu0 %v2105_v17 }
 0xa67   : > { %2004 = vmatprep.subr.bf16.mxu0 %v2223_v10 }
 0xa6a   : > { %2005 = vmatpush3.bf16.msra.mxu0 %v2106_v18 }
 0xb0d   : > { %v1388_v46 = vpop.f32.mrf.mxu0 }
 0xb0e   : > { %v1394_v47 = vadd.f32 %v1388_v46, %v1236_v30 }
 0xb0f   : > { %v1980_v48 = vpop.f32.mrf.mxu0 }
 0xb10   : > { %v2586_v49 = vadd.f32 %v1394_v47, %v2448_v2  ;;  %v2098_v2 = vld [vmem:[%s2427_s18] sm:$0xff]   ;;  %s2751_s18 = scalar_lea.vmem %s2750_s22, %s2384_s30  ;;  %s2755_s30 = sld [smem:[#allocation23_spill]] }
 0xb11   : > { %v1391_v50 = vpop.f32.mrf.mxu0  ;;  %1985 = vmatpush3.bf16.msra.mxu1 %v2098_v2  ;;  %v1396_v0 = vld [vmem:[%s2751_s18] sm:$0x1]  ;;  %s2133_s22 = sshll.u32 %s2237_s19, 4  ;;  %s2134_s22 = int_to_ptr.vmem [resolvable:$false] %s2133_s22 }
 0xb12   : > { %v1400_v51 = vsel %vm660_vm1, %v2586_v49, 0.0  ;;  %v1397_v3 = vunpack.c.l.bf16 %v1396_v0  ;;  %s2135_s18 = scalar_lea.vmem %s2134_s22, 128  ;;  %p2136_p5 = scmp.lt.s32.totalorder %s1624_s13, %s2134_s22 }
 0xb13   : > { %1401 = vadd.xlane.f32.xlu0 %v1400_v51  ;;  %v1981_v52 = vpop.f32.mrf.mxu0  ;;  %p2137_p6 = scmp.lt.s32.totalorder %s2135_s18, %s2129_s23 }
 0xb14   : > { %v1416_v5 = vrot.slane %v1397_v3, %v2474_v20 }
 0xb15   : > { %p2138_p7 = por %p2137_p6, %p2136_p5 }
 0xb16   : > { %s2756_s17 = smov %s2755_s30  ;;  %s2641_s14 = scalar_lea.hbm %s2755_s30, %s1856_s5 }
 0xb17   : > { %p2139_p8 = pnand %p2138_p7, %p2132_p4 }
 0xb9c   : > { %v1402_v53 = vpop.xlane.xlu0 %1401 }
 0xb9d   : > { %v1403_v54 = vmul.f32 0.03125, %v1402_v53 }
 0xb9f   : > { %v1404_v55 = vsub.f32 %v2586_v49, %v1403_v54 }
 0xba1   : > { %v1405_v56 = vmul.f32 %v1404_v55, %v1404_v55 }
 0xba3   : > { %v1406_v57 = vsel %vm660_vm1, %v1405_v56, 0.0 }
 0xba4   : > { %1407 = vadd.xlane.f32.xlu1 %v1406_v57 }
 0xc2d   : > { %v1408_v61 = vpop.xlane.xlu1 %1407 }
 0xc2e   : > { %v1409_v62 = vmul.f32 0.03125, %v1408_v61 }
 0xc30   : > { %v1410_v63 = vadd.f32 1e-05, %v1409_v62 }
 0xc32   : > { %2125 = vrsqrt.f32 %v1410_v63 }
 0xc3f   : > { %v2126_v6 = vpop.eup %2125 }
 0xc40   : > { %v1412_v7 = vmul.f32 %v2126_v6, %v1404_v55 }
 0xc42   : > { %v1417_v9 = vmul.f32 %v1416_v5, %v1412_v7 }
 0xc44   : > { %v1422_v11 = vadd.f32 %v1421_v8, %v1417_v9 }
 0xc46   : > { %v1423_v12 = vpack.c.bf16 %v1422_v11, %v1422_v11 }
 0xc48   : > { %1987 = vmatmul.mubr.msk.bf16.vlgmr.msra.gmra.mxu1 %vm660_vm1, %v1423_v12 }
 0xd08   : > { %v1483_v23 = vpop.f32.mrf.mxu1 }
 0xd09   : > { %v1484_v24 = vadd.f32 %v1483_v23, %v1433_v22 }
 0xd0a   : > { %v1988_v25 = vpop.f32.mrf.mxu1 }
 0xd0b   : > { %v1490_v26 = vmul.f32 0.70710677, %v1484_v24  ;;  %v1489_v28 = vmul.f32 0.5, %v1484_v24 }
 0xd0c   : > { %v1486_v27 = vpop.f32.mrf.mxu1 }
 0xd0d   : > { %2127 = verf.f32 %v1490_v26 }
 0xd0e   : > { %v1989_v10 = vpop.f32.mrf.mxu1 }
 0xd1a   : > { %v2128_v45 = vpop.eup %2127 }
 0xd1b   : > { %v1492_v29 = vadd.f32 1.0, %v2128_v45 }
 0xd1d   : > { %v1493_v30 = vmul.f32 %v1492_v29, %v1489_v28 }
 0xd1f   : > { %v1494_v31 = vpack.c.bf16 %v1493_v30, %v1493_v30 }
 0xd21   : > { %2007 = vmatmul.mubr.bf16.vlgmr.msra.gmra.mxu0 %v1494_v31 }
 0xde1   : > { %v1599_v34 = vpop.f32.mrf.mxu0 }
 0xde2   : > { %v1600_v36 = vadd.f32 %v1599_v34, %v1516_v33 }
 0xde3   : > { %v2008_v37 = vpop.f32.mrf.mxu0 }
 0xde4   : > { %v1605_v38 = vadd.f32 %v1600_v36, %v2586_v49 }
 0xde5   : > { %v1602_v39 = vpop.f32.mrf.mxu0 }
 0xde6   : > { %v1606_v40 = vpack.c.bf16 %v1605_v38, %v1605_v38 }
 0xde7   : > { %v2009_v41 = vpop.f32.mrf.mxu0 }
 0xde8   : > { %1608 = vst.msk [vmem:[%s2443_s26] sm:$0xf] %vm1607_vm6, %v1606_v40 }
 0xde9   : > { %2142 = shalt.err (!%p2139_p8)
}
 0xdea   : > { %s2143_s26 = scalar_lea.hbm %s2641_s14, 64  ;;  %s2147_s0 = scalar_lea.hbm %s2756_s17, 128 }
 0xdeb   : > { %p2144_p10 = scmp.ne.s32.totalorder %s2641_s14, %s2143_s26  ;;  %p2148_p13 = scmp.lt.s32.totalorder %s2641_s14, %s2756_s17 }
 0xdec   : > { %p2149_p0 = scmp.lt.s32.totalorder %s2147_s0, %s2143_s26 }
 0xded   : > { %p2145_p11 = pnand %p2144_p10, %p2357_p3 }
 0xdee   : > { %p2150_p1 = por %p2149_p0, %p2148_p13 }
 0xdef   : > { %p2146_p12 = pneg %p2145_p11 }
 0xdf1   : > { %p2151_p2 = pnand %p2150_p1, %p2146_p12 }
 0xdf3   : > { %2154 = shalt.err (!%p2151_p2)
}
 0xdf4   : > { %2010 = dma.vmem_to_hbm [thread:$0]  (%p2357_p3), %s1624_s13, 64, %s2641_s14, %s1610_s28  }
 0xdf5 PF: > { %s2758_s7 = sld [smem:[#allocation12_spill]] }
 0xdf6   : > { %s2759_s11 = sld [smem:[#allocation5_spill]] }
 0xdfb   : > { %p2016_p4 = scmp.ge.s32.totalorder %s2758_s7, 2 }
 0xdfc   : > { %s1635_s5 = sand.u32 1, %s2759_s11  }
 0xdfd   : > { %p2013_p5 = pnand %p2016_p4, %p2367_p9  ;;  %s1636_s27 = scalar_lea.sflag [#allocation3], %s1635_s5 }
 0xdff   : > { %p2014_p6 = pneg %p2013_p5 }
 0xe01   : > { %2188 = dma.done.wait (%p2014_p6), %s1636_s27, 64  }
 0xe02   : > { %2190 = vsyncadd (%p2014_p6), %s1636_s27, 4294967232  ;;  %s26_s15 = sadd.s32 1, %s2758_s7   ;;  %s2761_s25 = sld [smem:[#allocation6_spill]] }
 0xe03   : > { %p23_p7 = scmp.ge.s32.totalorder %s26_s15, 6   ;;  %s2762_s26 = sld [smem:[#allocation7_spill]] }
 0xe04   : > { %s2763_s27 = sld [smem:[#allocation17_spill]] }
 0xe05   : > { %s2764_s28 = sld [smem:[#allocation10_spill]]  ;;  %25 = sbr.rel (!%p23_p7) target bundleno = 12 (0xc), region = 147 }
 0xe06   : > { %s2765_s29 = sld [smem:[#allocation11_spill]] }
 0xe07   : > { %s2766_s30 = sld [smem:[#allocation13_spill]] }
 0xe08   : > { %s2767_s14 = sld [smem:[#allocation15_spill]] }
 0xe0a   :  { %1641 = vsyncpa [#allocation3], 1 }
 0xe0b   :  { %1643 = vsyncpa [#allocation3 + $0x1], 1 }

</bundles_post_ra>
